<compile_context>
chip_gen: v7x
topology: tpu7x:2x2x1
jax: 0.10.0
libtpu: 0.0.40
codegen_flags: <defaults>
</compile_context>

<pallas_src>
import functools

import jax
import jax.numpy as jnp
from jax.experimental import pallas as pl
from jax.experimental.pallas import tpu as pltpu


def _round_up(x: int, m: int) -> int:
    return ((x + m - 1) // m) * m


def _layernorm_kernel_plain(x_ref, params_ref, o_ref, *, epsilon, embed_dim):
    """pack == 1: one (block_rows, embed_dim) tile, plain per-row reductions."""
    x = x_ref[...].astype(jnp.float32)                        # (tm, D)
    inv_d = jnp.float32(1.0 / embed_dim)
    inv_dm1 = jnp.float32(1.0 / max(embed_dim - 1, 1))        # unbiased variance
    eps = jnp.float32(epsilon)

    s1 = jnp.sum(x, axis=-1, keepdims=True)                   # (tm, 1)
    s2 = jnp.sum(x * x, axis=-1, keepdims=True)               # (tm, 1)
    mean = s1 * inv_d
    var = (s2 - s1 * mean) * inv_dm1                          # sum((x-mean)^2)/(D-1)
    inv_std = jax.lax.rsqrt(var + eps)

    g = params_ref[0:1, :]
    b = params_ref[1:2, :]
    o_ref[...] = ((x - mean) * inv_std * g + b).astype(o_ref.dtype)


def _layernorm_kernel_packed(x_ref, params_ref, seg_ref, segt_ref, o_ref, *,
                             epsilon, embed_dim, pack):
    """pack > 1: each 128-lane stripe holds `pack` independent rows of length
    `embed_dim`; per-row reduce/broadcast via tiny 0/1 segment matmuls (the MXU
    is otherwise idle in this HBM-bound kernel)."""
    x = x_ref[...].astype(jnp.float32)                        # (tm, L), L = pack*D
    inv_d = jnp.float32(1.0 / embed_dim)
    inv_dm1 = jnp.float32(1.0 / max(embed_dim - 1, 1))
    eps = jnp.float32(epsilon)

    seg = seg_ref[...]                                        # (L, pack)
    segt = segt_ref[...]                                      # (pack, L)
    dot = functools.partial(jnp.dot,
                            preferred_element_type=jnp.float32,
                            precision=jax.lax.Precision.HIGHEST)

    s1 = dot(x, seg)                                          # (tm, pack)
    s2 = dot(x * x, seg)                                      # (tm, pack)
    mean = s1 * inv_d
    var = (s2 - s1 * mean) * inv_dm1
    inv_std = jax.lax.rsqrt(var + eps)                        # (tm, pack)

    scale = dot(inv_std, segt)                                # (tm, L)
    shift = dot(mean * inv_std, segt)                         # (tm, L)

    g = params_ref[0:1, :]
    b = params_ref[1:2, :]
    o_ref[...] = ((x * scale - shift) * g + b).astype(o_ref.dtype)


def layer_norm(x, gain, bias, *, epsilon=1e-5, block_rows=None):
    """x: [batch, length, embed_dim]; gain/bias: [embed_dim]."""
    bsz, length, d = x.shape
    rows = bsz * length
    itemsize = jnp.dtype(x.dtype).itemsize
    sublane = {4: 8, 2: 16, 1: 32}.get(itemsize, 8)

    # Lane packing: pack = 128//d logical rows per 128-lane stripe when d is a
    # small divisor of 128 AND the packed reshape is a pure view (rows % pack == 0),
    # so every store is a full-lane write and no padding copy is needed.
    pack = 1
    if d < 128 and 128 % d == 0 and rows % (128 // d) == 0:
        pack = 128 // d
    # TODO(synk): lane-dense path (pad+mask) for embed dims that neither divide
    # nor are multiples of 128, and for ragged row counts with small d.
    lane_width = pack * d
    packed_rows = rows // pack

    xp = x.reshape(packed_rows, lane_width)                   # pure view, no copy

    # ---- per-generation VMEM budgets -------------------------------------
    try:
        vmem_cap = int(pltpu.get_tpu_info().vmem_capacity_bytes)
    except Exception:
        vmem_cap = 64 << 20                                   # conservative fallback
    # Working-set target: ~56 MiB on 128 MiB parts (v5e/v6e), ~28 MiB on 64 MiB (v7x).
    budget = (vmem_cap * 7) // 16

    # Bytes per packed row in flight: 2x double-buffered in + out blocks plus
    # ~3 f32 full-tile temporaries (fused-reduction kernel body).
    per_row_bytes = lane_width * (4 * itemsize + 3 * 4)
    if block_rows is None:
        block_rows = int(budget // per_row_bytes)
    block_rows = max(sublane, block_rows)

    # Keep at least two grid steps when there is enough work so v7x's two
    # TensorCores both get rows ("parallel" shards the row grid across them).
    if packed_rows >= 2 * sublane:
        block_rows = min(block_rows, _round_up(pl.cdiv(packed_rows, 2), sublane))

    if block_rows >= packed_rows:
        block_rows = packed_rows                              # single block == full dim
    else:
        block_rows = max(sublane, (block_rows // sublane) * sublane)
    num_blocks = pl.cdiv(packed_rows, block_rows)             # ragged last block is
                                                              # masked by Pallas; rows
                                                              # are independent so this
                                                              # is safe (no jnp.pad).

    # Explicit VMEM limit: actual need + headroom, capped at 3/4 of physical
    # (48 MiB on v7x; the 16 MiB scoped default on v5e would otherwise cap tiles).
    block_bytes = block_rows * lane_width * itemsize
    need = 4 * block_bytes + 3 * block_rows * lane_width * 4 + (2 << 20)
    vmem_limit = int(min(max(need, 32 << 20), (vmem_cap * 3) // 4))

    # Parameters: cast + tile once, folded into a single resident (2, L) array.
    params = jnp.stack([jnp.tile(gain.astype(jnp.float32), pack),
                        jnp.tile(bias.astype(jnp.float32), pack)], axis=0)

    x_spec = pl.BlockSpec((block_rows, lane_width), lambda i: (i, 0))
    p_spec = pl.BlockSpec((2, lane_width), lambda i: (0, 0))
    out_spec = pl.BlockSpec((block_rows, lane_width), lambda i: (i, 0))

    if pack == 1:
        kernel = functools.partial(_layernorm_kernel_plain,
                                   epsilon=epsilon, embed_dim=d)
        in_specs = [x_spec, p_spec]
        args = (xp, params)
    else:
        # 0/1 segment matrices mapping lanes <-> logical row within the stripe.
        lane_seg = (jnp.arange(lane_width) // d)[:, None] == jnp.arange(pack)[None, :]
        seg = lane_seg.astype(jnp.float32)                    # (L, pack)
        segt = jnp.transpose(seg)                             # (pack, L)
        kernel = functools.partial(_layernorm_kernel_packed,
                                   epsilon=epsilon, embed_dim=d, pack=pack)
        in_specs = [x_spec, p_spec,
                    pl.BlockSpec((lane_width, pack), lambda i: (0, 0)),
                    pl.BlockSpec((pack, lane_width), lambda i: (0, 0))]
        args = (xp, params, seg, segt)

    out = pl.pallas_call(
        kernel,
        out_shape=jax.ShapeDtypeStruct((packed_rows, lane_width), x.dtype),
        grid_spec=pltpu.PrefetchScalarGridSpec(
            num_scalar_prefetch=0,
            grid=(num_blocks,),
            in_specs=in_specs,
            out_specs=out_spec,
        ),
        compiler_params=pltpu.CompilerParams(
            dimension_semantics=("parallel",),
            vmem_limit_bytes=vmem_limit,
        ),
    )(*args)

    return out.reshape(bsz, length, d)


def layer_norm_ref(x, gain, bias, epsilon=1e-5):
    xf = x.astype(jnp.float32)
    mean = jnp.mean(xf, axis=-1, keepdims=True)
    centered = xf - mean
    var = jnp.sum(centered * centered, axis=-1, keepdims=True) / (x.shape[-1] - 1)
    normalised = centered / jnp.sqrt(var + epsilon)
    return (normalised * gain.astype(jnp.float32)
            + bias.astype(jnp.float32)).astype(x.dtype)


if __name__ == "__main__":
    key = jax.random.PRNGKey(0)
    batch, seq, hidden = 2, 8, 32

    x = jax.random.normal(key, (batch, seq, hidden), dtype=jnp.float32)
    # Matches nn.Parameter(torch.ones/zeros(embed_dim)) init.
    gain = jnp.ones((hidden,), dtype=jnp.float32)
    bias = jnp.zeros((hidden,), dtype=jnp.float32)

    out = layer_norm(x, gain, bias, epsilon=1e-5)
    out = jax.block_until_ready(out)

    ref = layer_norm_ref(x, gain, bias, epsilon=1e-5)
    assert out.shape == (batch, seq, hidden)
    assert jnp.allclose(out, ref, atol=3e-5, rtol=3e-5), "mismatch vs reference"

    print("KERNEL_OK")
</pallas_src>

<mosaic_0001>
module attributes {stable_mosaic.version = 11 : i64} {
  func.func @_layernorm_kernel_packed(%arg0: i32, %arg1: memref<4x128xf32, #tpu.memory_space<vmem>>, %arg2: memref<2x128xf32, #tpu.memory_space<vmem>>, %arg3: memref<128x4xf32, #tpu.memory_space<vmem>>, %arg4: memref<4x128xf32, #tpu.memory_space<vmem>>, %arg5: memref<4x128xf32, #tpu.memory_space<vmem>>) attributes {dimension_semantics = [#tpu.dimension_semantics<parallel>], iteration_bounds = array<i64: 1>, scalar_prefetch = 0 : i64, scratch_operands = 0 : i64, tpu.core_type = #tpu.core_type<tc>, window_params = [{transform_indices = @transform_0, window_bounds = array<i64: 4, 128>}, {pipeline_mode = #tpu.pipeline_mode<synchronous>, transform_indices = @transform_1, window_bounds = array<i64: 2, 128>}, {pipeline_mode = #tpu.pipeline_mode<synchronous>, transform_indices = @transform_2, window_bounds = array<i64: 128, 4>}, {pipeline_mode = #tpu.pipeline_mode<synchronous>, transform_indices = @transform_3, window_bounds = array<i64: 4, 128>}, {transform_indices = @transform_4, window_bounds = array<i64: 4, 128>}]} {
    %c0 = arith.constant 0 : index
    %c0_0 = arith.constant 0 : index
    %0 = vector.load %arg1[%c0, %c0_0] : memref<4x128xf32, #tpu.memory_space<vmem>>, vector<4x128xf32>
    %c0_1 = arith.constant 0 : index
    %c0_2 = arith.constant 0 : index
    %1 = vector.load %arg3[%c0_1, %c0_2] : memref<128x4xf32, #tpu.memory_space<vmem>>, vector<128x4xf32>
    %c0_3 = arith.constant 0 : index
    %c0_4 = arith.constant 0 : index
    %2 = vector.load %arg4[%c0_3, %c0_4] : memref<4x128xf32, #tpu.memory_space<vmem>>, vector<4x128xf32>
    %cst = arith.constant dense<0.000000e+00> : vector<4x4xf32>
    %3 = tpu.matmul %0, %1, %cst {dimension_numbers = #tpu.dot_dimension_numbers<[1], [0], [0], [1], [0, 0, 1, 1], [], []>, precision = #tpu.contract_precision<fp32>} : vector<4x128xf32>, vector<128x4xf32>, vector<4x4xf32> -> vector<4x4xf32>
    %4 = arith.mulf %0, %0 : vector<4x128xf32>
    %cst_5 = arith.constant dense<0.000000e+00> : vector<4x4xf32>
    %5 = tpu.matmul %4, %1, %cst_5 {dimension_numbers = #tpu.dot_dimension_numbers<[1], [0], [0], [1], [0, 0, 1, 1], [], []>, precision = #tpu.contract_precision<fp32>} : vector<4x128xf32>, vector<128x4xf32>, vector<4x4xf32> -> vector<4x4xf32>
    %cst_6 = arith.constant 3.125000e-02 : f32
    %6 = vector.broadcast %cst_6 : f32 to vector<4x4xf32>
    %7 = arith.mulf %3, %6 : vector<4x4xf32>
    %8 = arith.mulf %3, %7 : vector<4x4xf32>
    %9 = arith.subf %5, %8 : vector<4x4xf32>
    %cst_7 = arith.constant 0.0322580636 : f32
    %10 = vector.broadcast %cst_7 : f32 to vector<4x4xf32>
    %11 = arith.mulf %9, %10 : vector<4x4xf32>
    %cst_8 = arith.constant 9.99999974E-6 : f32
    %12 = vector.broadcast %cst_8 : f32 to vector<4x4xf32>
    %13 = arith.addf %11, %12 : vector<4x4xf32>
    %14 = math.rsqrt %13 : vector<4x4xf32>
    %cst_9 = arith.constant dense<0.000000e+00> : vector<4x128xf32>
    %15 = tpu.matmul %14, %2, %cst_9 {dimension_numbers = #tpu.dot_dimension_numbers<[1], [0], [0], [1], [0, 0, 1, 1], [], []>, precision = #tpu.contract_precision<fp32>} : vector<4x4xf32>, vector<4x128xf32>, vector<4x128xf32> -> vector<4x128xf32>
    %16 = arith.mulf %7, %14 : vector<4x4xf32>
    %cst_10 = arith.constant dense<0.000000e+00> : vector<4x128xf32>
    %17 = tpu.matmul %16, %2, %cst_10 {dimension_numbers = #tpu.dot_dimension_numbers<[1], [0], [0], [1], [0, 0, 1, 1], [], []>, precision = #tpu.contract_precision<fp32>} : vector<4x4xf32>, vector<4x128xf32>, vector<4x128xf32> -> vector<4x128xf32>
    %c0_11 = arith.constant 0 : index
    %c0_12 = arith.constant 0 : index
    %18 = vector.load %arg2[%c0_11, %c0_12] : memref<2x128xf32, #tpu.memory_space<vmem>>, vector<1x128xf32>
    %c1 = arith.constant 1 : index
    %c0_13 = arith.constant 0 : index
    %19 = vector.load %arg2[%c1, %c0_13] : memref<2x128xf32, #tpu.memory_space<vmem>>, vector<1x128xf32>
    %20 = arith.mulf %0, %15 : vector<4x128xf32>
    %21 = arith.subf %20, %17 : vector<4x128xf32>
    %22 = vector.broadcast %18 : vector<1x128xf32> to vector<4x128xf32>
    %23 = arith.mulf %21, %22 : vector<4x128xf32>
    %24 = vector.broadcast %19 : vector<1x128xf32> to vector<4x128xf32>
    %25 = arith.addf %23, %24 : vector<4x128xf32>
    %c0_14 = arith.constant 0 : index
    %c0_15 = arith.constant 0 : index
    %26 = vector.load %arg5[%c0_14, %c0_15] : memref<4x128xf32, #tpu.memory_space<vmem>>, vector<4x128xf32>
    tpu.vector_store %arg5[%c0_14, %c0_15], %25 {strides = array<i32>} : memref<4x128xf32, #tpu.memory_space<vmem>>, vector<4x128xf32>,
    return
  }
  func.func @transform_0(%arg0: i32) -> (i32, i32) {
    %c0_i32 = arith.constant 0 : i32
    %c0_i32_0 = arith.constant 0 : i32
    return %arg0, %c0_i32 : i32, i32
  }
  func.func @transform_1(%arg0: i32) -> (i32, i32) {
    %c0_i32 = arith.constant 0 : i32
    %c0_i32_0 = arith.constant 0 : i32
    %c0_i32_1 = arith.constant 0 : i32
    return %c0_i32, %c0_i32_0 : i32, i32
  }
  func.func @transform_2(%arg0: i32) -> (i32, i32) {
    %c0_i32 = arith.constant 0 : i32
    %c0_i32_0 = arith.constant 0 : i32
    %c0_i32_1 = arith.constant 0 : i32
    return %c0_i32, %c0_i32_0 : i32, i32
  }
  func.func @transform_3(%arg0: i32) -> (i32, i32) {
    %c0_i32 = arith.constant 0 : i32
    %c0_i32_0 = arith.constant 0 : i32
    %c0_i32_1 = arith.constant 0 : i32
    return %c0_i32, %c0_i32_0 : i32, i32
  }
  func.func @transform_4(%arg0: i32) -> (i32, i32) {
    %c0_i32 = arith.constant 0 : i32
    %c0_i32_0 = arith.constant 0 : i32
    return %arg0, %c0_i32 : i32, i32
  }
}

</mosaic_0001>

<bundles_post_ra>
// kernel: tpu_custom_call.1
= control target key start
LH: loop header
LB: loop body
LE: loop exit
PB: predicated region body
PF: predicated region fallthrough
CT: control target
= control target key end

     0   :  { %v3326_v3 = vmov 0.0|0.0   ;;  %vm3327_vm0 = vmmov 0   ;;  %v3328_v11 = vmov 0.0   ;;  %s3840_s0 = inlined_call_operand.vmem [shape: f32[4,128], index: 0, kind: input, shape index: {}]   ;;  %s3841_s1 = inlined_call_operand.vmem [shape: f32[2,128], index: 1, kind: input, shape index: {}]   ;;  %s3842_s2 = inlined_call_operand.vmem [shape: f32[128,4], index: 2, kind: input, shape index: {}]   ;;  %s3843_s3 = inlined_call_operand.vmem [shape: f32[4,128], index: 3, kind: input, shape index: {}]   ;;  %s3844_s4 = inlined_call_operand.hbm [shape: f32[4,128], index: 4, kind: output, shape index: {}]  }
   0x1   :  { %v19_v0 = vld [vmem:[%s3842_s2] sm:$0xff]  ;;  %v20_v1 = vld [vmem:[%s3842_s2 + $0x8] sm:$0xff]  ;;  %v21_v2 = vld [vmem:[%s3842_s2 + $0x10] sm:$0xff]  ;;  %2968 = vmatprep.subr.bf16.mxu0 %v3326_v3  ;;  %3112 = vmatprep.subr.bf16.mxu1 %v3326_v3 }
   0x2   :  { %v37_v4 = vand.u32 4294901760, %v19_v0  ;;  %v40_v5 = vand.u32 4294901760, %v20_v1  ;;  %v3369_v6 = vld [vmem:[%s3842_s2 + $0x18] sm:$0xff]  ;;  %v43_v7 = vand.u32 4294901760, %v21_v2  ;;  %v3375_v9 = vld [vmem:[%s3842_s2 + $0x20] sm:$0xff]  ;;  %v3380_v10 = vld [vmem:[%s3842_s2 + $0x28] sm:$0xff]  ;;  %2520 = vmatprep.mubr.msk.f32.mxu0 %vm3327_vm0, %v3328_v11  ;;  %2730 = vmatprep.mubr.msk.f32.mxu1 %vm3327_vm0, %v3328_v11 }
   0x3   :  { %v46_v8 = vand.u32 4294901760, %v3369_v6  ;;  %v49_v14 = vand.u32 4294901760, %v3375_v9  ;;  %v52_v15 = vand.u32 4294901760, %v3380_v10  ;;  %v3401_v16 = vld [vmem:[%s3842_s2 + $0x30] sm:$0xff]  ;;  %v3406_v17 = vld [vmem:[%s3842_s2 + $0x38] sm:$0xff] }
   0x4   :  { %v3386_v12 = vpack.c.bf16 %v40_v5, %v37_v4 }
   0x5   :  { %v3392_v13 = vpack.c.bf16 %v46_v8, %v43_v7 }
   0x6   :  { %2970 = vmatpush3.bf16.msra.mxu0 %v3386_v12  ;;  %3114 = vmatpush3.bf16.msra.mxu1 %v3386_v12 }
   0x7   :  { %2971 = vmatprep.subr.bf16.mxu0 %v3326_v3  ;;  %3115 = vmatprep.subr.bf16.mxu1 %v3326_v3 }
   0x8   :  { %9 = vsyncpa [#allocation3], 0  ;;  %v3411_v18 = vld [vmem:[%s3840_s0] sm:$0xf]  ;;  %v3415_v19 = vpack.c.bf16 %v52_v15, %v49_v14  ;;  %v55_v20 = vand.u32 4294901760, %v3401_v16  ;;  %v58_v21 = vand.u32 4294901760, %v3406_v17  ;;  %v3454_v35 = vsub.f32 %v19_v0, %v37_v4 }
   0x9   :  { %v27_v22 = vld [vmem:[%s3842_s2 + $0x40] sm:$0xff]  ;;  %v28_v23 = vld [vmem:[%s3842_s2 + $0x48] sm:$0xff]  ;;  %v3428_v24 = vand.u32 4294901760, %v3411_v18  ;;  %v677_v25 = vmul.f32 %v3411_v18, %v3411_v18  ;;  %v29_v26 = vld [vmem:[%s3842_s2 + $0x50] sm:$0xff]  ;;  %v3462_v37 = vsub.f32 %v20_v1, %v40_v5  ;;  %v3464_v38 = vsub.f32 %v21_v2, %v43_v7  ;;  %s3329_s26 = smov [#allocation2]  }
   0xa   :  { %2973 = vmatpush3.bf16.msra.mxu0 %v3392_v13  ;;  %3117 = vmatpush3.bf16.msra.mxu1 %v3392_v13  ;;  %v30_v27 = vld [vmem:[%s3842_s2 + $0x58] sm:$0xff]  ;;  %v31_v28 = vld [vmem:[%s3842_s2 + $0x60] sm:$0xff]  ;;  %v3443_v29 = vpack.c.bf16 %v58_v21, %v55_v20  ;;  %v61_v30 = vand.u32 4294901760, %v27_v22  ;;  %v64_v31 = vand.u32 4294901760, %v28_v23  ;;  %v32_v32 = vld [vmem:[%s3842_s2 + $0x68] sm:$0xff]  ;;  %v67_v39 = vand.u32 4294901760, %v29_v26 }
   0xb   :  { %2974 = vmatprep.subr.bf16.mxu0 %v3326_v3  ;;  %3118 = vmatprep.subr.bf16.mxu1 %v3326_v3  ;;  %v33_v33 = vld [vmem:[%s3842_s2 + $0x70] sm:$0xff]  ;;  %v34_v34 = vld [vmem:[%s3842_s2 + $0x78] sm:$0xff]  ;;  %v3460_v36 = vsub.f32 %v3411_v18, %v3428_v24  ;;  %v70_v40 = vand.u32 4294901760, %v30_v27  ;;  %v3466_v41 = vand.u32 4294901760, %v677_v25  ;;  %v73_v42 = vand.u32 4294901760, %v31_v28  ;;  %s2250_s27 = sshll.u32 %s3329_s26, 4  ;;  %s2251_s27 = int_to_ptr.vmem [resolvable:$true] %s2250_s27 }
   0xc   :  { %v76_v43 = vand.u32 4294901760, %v32_v32  ;;  %v79_v44 = vand.u32 4294901760, %v33_v33  ;;  %v82_v45 = vand.u32 4294901760, %v34_v34  ;;  %v3470_v46 = vpack.c.bf16 %v64_v31, %v61_v30  ;;  %s3302_s28 = scalar_lea.vmem %s2251_s27, 64  ;;  %p3307_p1 = scmp.lt.s32.totalorder %s2251_s27, %s2251_s27 }
   0xd   :  { %v130_v47 = vand.u32 4294901760, %v3454_v35  ;;  %v3846_v48 = vand.u32 4294901760, %v3460_v36  ;;  %v137_v49 = vand.u32 4294901760, %v3462_v37  ;;  %v144_v50 = vand.u32 4294901760, %v3464_v38  ;;  %p3303_p0 = scmp.ne.s32.totalorder %s2251_s27, %s3302_s28  ;;  %p3308_p2 = scmp.lt.s32.totalorder %s3302_s28, %s3302_s28 }
   0xe   :  { %2976 = vmatpush3.bf16.msra.mxu0 %v3415_v19  ;;  %3120 = vmatpush3.bf16.msra.mxu1 %v3415_v19  ;;  %v3481_v51 = vsub.f32 %v3369_v6, %v46_v8  ;;  %v3484_v52 = vsub.f32 %v677_v25, %v3466_v41  ;;  %v3486_v53 = vpack.c.bf16 %v70_v40, %v67_v39  ;;  %vm1329_vm1 = vcmask 1043456  }
   0xf   :  { %2977 = vmatprep.subr.bf16.mxu0 %v3326_v3  ;;  %3121 = vmatprep.subr.bf16.mxu1 %v3326_v3  ;;  %v3488_v54 = vpack.c.bf16 %v76_v43, %v73_v42  ;;  %v3490_v55 = vpack.c.bf16 %v82_v45, %v79_v44  ;;  %v131_v56 = vsub.f32 %v3454_v35, %v130_v47  ;;  %vm1325_vm2 = vcmask 31744   ;;  %p3309_p3 = por %p3308_p2, %p3307_p1 }
  0x10   :  { %v3496_v57 = vsub.f32 %v3375_v9, %v49_v14  ;;  %v3499_v58 = vsub.f32 %v3380_v10, %v52_v15  ;;  %v120_v59 = vsub.f32 %v3460_v36, %v3846_v48  ;;  %v138_v60 = vsub.f32 %v3462_v37, %v137_v49 }
  0x11   :  { %v3508_v61 = vsub.f32 %v3464_v38, %v144_v50  ;;  %v151_v62 = vand.u32 4294901760, %v3481_v51  ;;  %v3845_v63 = vand.u32 4294901760, %v3484_v52  ;;  %v3513_v0 = vsub.f32 %v3401_v16, %v55_v20  ;;  %p3310_p4 = pnand %p3309_p3, %p3303_p0 }
  0x12   :  { %2979 = vmatpush3.bf16.msra.mxu0 %v3443_v29  ;;  %3123 = vmatpush3.bf16.msra.mxu1 %v3443_v29  ;;  %v3516_v1 = vsub.f32 %v3406_v17, %v58_v21  ;;  %v3518_v2 = vsub.f32 %v27_v22, %v61_v30  ;;  %v3520_v4 = vsub.f32 %v28_v23, %v64_v31  ;;  %v158_v8 = vand.u32 4294901760, %v3496_v57 }
  0x13   :  { %2980 = vmatprep.subr.bf16.mxu0 %v3326_v3  ;;  %3124 = vmatprep.subr.bf16.mxu1 %v3326_v3  ;;  %v3522_v5 = vsub.f32 %v29_v26, %v67_v39  ;;  %v3524_v6 = vsub.f32 %v30_v27, %v70_v40  ;;  %v3526_v7 = vsub.f32 %v31_v28, %v73_v42  ;;  %v132_v15 = vand.u32 4294901760, %v131_v56 }
  0x14   :  { %v3531_v9 = vsub.f32 %v32_v32, %v76_v43  ;;  %v3533_v10 = vsub.f32 %v33_v33, %v79_v44  ;;  %v3535_v14 = vsub.f32 %v34_v34, %v82_v45  ;;  %v139_v16 = vand.u32 4294901760, %v138_v60 }
  0x15   :  { %v152_v17 = vsub.f32 %v3481_v51, %v151_v62  ;;  %v165_v20 = vand.u32 4294901760, %v3499_v58  ;;  %v762_v21 = vsub.f32 %v3484_v52, %v3845_v63  ;;  %v172_v22 = vand.u32 4294901760, %v3513_v0 }
  0x16   :  { %2982 = vmatpush3.bf16.msra.mxu0 %v3470_v46  ;;  %3126 = vmatpush3.bf16.msra.mxu1 %v3470_v46  ;;  %v179_v23 = vand.u32 4294901760, %v3516_v1  ;;  %v186_v25 = vand.u32 4294901760, %v3518_v2  ;;  %v193_v26 = vand.u32 4294901760, %v3520_v4  ;;  %v200_v27 = vand.u32 4294901760, %v3522_v5 }
  0x17   :  { %2983 = vmatprep.subr.bf16.mxu0 %v3326_v3  ;;  %3127 = vmatprep.subr.bf16.mxu1 %v3326_v3  ;;  %v207_v28 = vand.u32 4294901760, %v3524_v6  ;;  %v214_v30 = vand.u32 4294901760, %v3526_v7  ;;  %v221_v31 = vand.u32 4294901760, %v3531_v9  ;;  %v228_v32 = vand.u32 4294901760, %v3533_v10 }
  0x18   :  { %v3847_v33 = vand.u32 4294901760, %v3535_v14  ;;  %v3556_v34 = vpack.c.bf16 %v137_v49, %v130_v47  ;;  %v3560_v39 = vpack.c.bf16 %v151_v62, %v144_v50  ;;  %v3562_v40 = vpack.c.bf16 %v165_v20, %v158_v8 }
  0x19   :  { %v3564_v42 = vpack.c.bf16 %v179_v23, %v172_v22  ;;  %v3566_v43 = vpack.c.bf16 %v193_v26, %v186_v25  ;;  %v3568_v44 = vpack.c.bf16 %v207_v28, %v200_v27  ;;  %v3570_v45 = vpack.c.bf16 %v221_v31, %v214_v30 }
  0x1a   :  { %2985 = vmatpush3.bf16.msra.mxu0 %v3486_v53  ;;  %3129 = vmatpush3.bf16.msra.mxu1 %v3486_v53  ;;  %v3576_v47 = vpack.c.bf16 %v3847_v33, %v228_v32  ;;  %v121_v49 = vand.u32 4294901760, %v120_v59  ;;  %v763_v56 = vand.u32 4294901760, %v762_v21  ;;  %v159_v50 = vsub.f32 %v3496_v57, %v158_v8 }
  0x1b   :  { %2986 = vmatprep.subr.bf16.mxu0 %v3326_v3  ;;  %3130 = vmatprep.subr.bf16.mxu1 %v3326_v3  ;;  %v166_v60 = vsub.f32 %v3499_v58, %v165_v20  ;;  %v2993_v62 = vpack.c.bf16 %v139_v16, %v132_v15  ;;  %v146_v63 = vand.u32 4294901760, %v3508_v61  ;;  %v153_v48 = vand.u32 4294901760, %v152_v17 }
  0x1c   :  { %v160_v59 = vand.u32 4294901760, %v159_v50  ;;  %v173_v20 = vsub.f32 %v3513_v0, %v172_v22  ;;  %v180_v33 = vsub.f32 %v3516_v1, %v179_v23  ;;  %v201_v17 = vsub.f32 %v3522_v5, %v200_v27 }
  0x1d   :  { %v167_v21 = vand.u32 4294901760, %v166_v60  ;;  %v2996_v8 = vpack.c.bf16 %v153_v48, %v146_v63  ;;  %v187_v48 = vsub.f32 %v3518_v2, %v186_v25  ;;  %v194_v63 = vsub.f32 %v3520_v4, %v193_v26 }
  0x1e   :  { %2988 = vmatpush3.bf16.msra.mxu0 %v3488_v54  ;;  %3132 = vmatpush3.bf16.msra.mxu1 %v3488_v54  ;;  %v174_v15 = vand.u32 4294901760, %v173_v20  ;;  %v181_v16 = vand.u32 4294901760, %v180_v33  ;;  %v215_v25 = vsub.f32 %v3526_v7, %v214_v30  ;;  %v202_v33 = vand.u32 4294901760, %v201_v17 }
  0x1f   :  { %2989 = vmatprep.subr.bf16.mxu0 %v3326_v3  ;;  %3133 = vmatprep.subr.bf16.mxu1 %v3326_v3  ;;  %v2999_v61 = vpack.c.bf16 %v167_v21, %v160_v59  ;;  %v188_v23 = vand.u32 4294901760, %v187_v48  ;;  %v222_v27 = vsub.f32 %v3531_v9, %v221_v31  ;;  %v229_v30 = vsub.f32 %v3533_v10, %v228_v32 }
  0x20   :  { %v3002_v22 = vpack.c.bf16 %v181_v16, %v174_v15  ;;  %v216_v60 = vand.u32 4294901760, %v215_v25  ;;  %v3848_v59 = vand.u32 4294901760, %v3535_v14  ;;  %v3020_v15 = vpack.c.bf16 %v3481_v51, %v3464_v38  ;;  %v2259_v25 = vld [vmem:[%s3841_s1 + $0x1] ss:$0 sm:$0xff] }
  0x21   :  { %v3029_v38 = vpack.c.bf16 %v3520_v4, %v3518_v2  ;;  %v3032_v51 = vpack.c.bf16 %v3524_v6, %v3522_v5 }
  0x22   :  { %2991 = vmatpush3.bf16.msra.mxu0 %v3490_v55  ;;  %3135 = vmatpush3.bf16.msra.mxu1 %v3490_v55  ;;  %v236_v21 = vsub.f32 %v3535_v14, %v3848_v59 }
  0x23   :  { %2992 = vmatprep.subr.bf16.mxu0 %v3326_v3  ;;  %3136 = vmatprep.subr.bf16.mxu1 %v3326_v3 }
  0x24   :  { %v237_v20 = vand.u32 4294901760, %v236_v21 }
  0x25   :  { %2521 = vmatmul.mubr.f32.vlgmr.msra.gmra.mrb[0].mxu0 %v121_v49  ;;  %2731 = vmatmul.mubr.f32.vlgmr.msra.gmra.mrb[0].mxu1 %v763_v56  ;;  %v195_v49 = vand.u32 4294901760, %v194_v63  ;;  %v208_v56 = vsub.f32 %v3524_v6, %v207_v28 }
  0x26   :  { %2994 = vmatpush3.bf16.msra.mxu0 %v2993_v62  ;;  %3138 = vmatpush3.bf16.msra.mxu1 %v2993_v62  ;;  %v223_v62 = vand.u32 4294901760, %v222_v27 }
  0x27   :  { %2995 = vmatprep.subr.bf16.mxu0 %v3326_v3  ;;  %3139 = vmatprep.subr.bf16.mxu1 %v3326_v3  ;;  %v3005_v26 = vpack.c.bf16 %v195_v49, %v188_v23  ;;  %v209_v50 = vand.u32 4294901760, %v208_v56  ;;  %v2258_v23 = vld [vmem:[%s3841_s1] ss:$0 sm:$0xff] }
  0x28   :  { %2555 = vmatprep.mubr.msk.f32.mxu0 %vm3327_vm0, %v3328_v11  ;;  %2765 = vmatprep.mubr.msk.f32.mxu1 %vm3327_vm0, %v3328_v11  ;;  %v3011_v31 = vpack.c.bf16 %v223_v62, %v216_v60 }
  0x29   :  { %v3008_v28 = vpack.c.bf16 %v209_v50, %v202_v33 }
  0x2a   :  { %2997 = vmatpush3.bf16.msra.mxu0 %v2996_v8  ;;  %3141 = vmatpush3.bf16.msra.mxu1 %v2996_v8  ;;  %v230_v8 = vand.u32 4294901760, %v229_v30 }
  0x2b   :  { %2998 = vmatprep.subr.bf16.mxu0 %v3326_v3  ;;  %3142 = vmatprep.subr.bf16.mxu1 %v3326_v3 }
  0x2c   :  { %v3014_v32 = vpack.c.bf16 %v237_v20, %v230_v8 }
  0x2e   :  { %3000 = vmatpush3.bf16.msra.mxu0 %v2999_v61  ;;  %3144 = vmatpush3.bf16.msra.mxu1 %v2999_v61  ;;  %v3017_v61 = vpack.c.bf16 %v3462_v37, %v3454_v35  ;;  %v3023_v35 = vpack.c.bf16 %v3499_v58, %v3496_v57  ;;  %v3026_v37 = vpack.c.bf16 %v3516_v1, %v3513_v0  ;;  %v3849_v0 = vand.u32 4294901760, %v3460_v36 }
  0x2f   :  { %3001 = vmatprep.subr.bf16.mxu0 %v3326_v3  ;;  %3145 = vmatprep.subr.bf16.mxu1 %v3326_v3  ;;  %v3035_v57 = vpack.c.bf16 %v3531_v9, %v3526_v7  ;;  %v3038_v58 = vpack.c.bf16 %v3535_v14, %v3533_v10  ;;  %v3850_v1 = vand.u32 4294901760, %v3484_v52 }
  0x32   :  { %3003 = vmatpush3.bf16.msra.mxu0 %v3002_v22  ;;  %3147 = vmatpush3.bf16.msra.mxu1 %v3002_v22 }
  0x33   :  { %3004 = vmatprep.subr.bf16.mxu0 %v3326_v3  ;;  %3148 = vmatprep.subr.bf16.mxu1 %v3326_v3 }
  0x36   :  { %3006 = vmatpush3.bf16.msra.mxu0 %v3005_v26  ;;  %3150 = vmatpush3.bf16.msra.mxu1 %v3005_v26 }
  0x37   :  { %3007 = vmatprep.subr.bf16.mxu0 %v3326_v3  ;;  %3151 = vmatprep.subr.bf16.mxu1 %v3326_v3 }
  0x3a   :  { %3009 = vmatpush3.bf16.msra.mxu0 %v3008_v28  ;;  %3153 = vmatpush3.bf16.msra.mxu1 %v3008_v28 }
  0x3b   :  { %3010 = vmatprep.subr.bf16.mxu0 %v3326_v3  ;;  %3154 = vmatprep.subr.bf16.mxu1 %v3326_v3 }
  0x3e   :  { %3012 = vmatpush3.bf16.msra.mxu0 %v3011_v31  ;;  %3156 = vmatpush3.bf16.msra.mxu1 %v3011_v31 }
  0x3f   :  { %3013 = vmatprep.subr.bf16.mxu0 %v3326_v3  ;;  %3157 = vmatprep.subr.bf16.mxu1 %v3326_v3 }
  0x42   :  { %3015 = vmatpush3.bf16.msra.mxu0 %v3014_v32  ;;  %3159 = vmatpush3.bf16.msra.mxu1 %v3014_v32 }
  0x43   :  { %3016 = vmatprep.subr.bf16.mxu0 %v3326_v3  ;;  %3160 = vmatprep.subr.bf16.mxu1 %v3326_v3 }
  0x45   :  { %2556 = vmatmul.mubr.f32.vlgmr.msra.gmra.mrb[0].mxu0 %v3428_v24  ;;  %2766 = vmatmul.mubr.f32.vlgmr.msra.gmra.mrb[0].mxu1 %v3466_v41 }
  0x46   :  { %3018 = vmatpush3.bf16.msra.mxu0 %v3017_v61  ;;  %3162 = vmatpush3.bf16.msra.mxu1 %v3017_v61 }
  0x47   :  { %3019 = vmatprep.subr.bf16.mxu0 %v3326_v3  ;;  %3163 = vmatprep.subr.bf16.mxu1 %v3326_v3 }
  0x48   :  { %2590 = vmatprep.mubr.msk.f32.mxu0 %vm3327_vm0, %v3328_v11  ;;  %2800 = vmatprep.mubr.msk.f32.mxu1 %vm3327_vm0, %v3328_v11 }
  0x4a   :  { %3021 = vmatpush3.bf16.msra.mxu0 %v3020_v15  ;;  %3165 = vmatpush3.bf16.msra.mxu1 %v3020_v15 }
  0x4b   :  { %3022 = vmatprep.subr.bf16.mxu0 %v3326_v3  ;;  %3166 = vmatprep.subr.bf16.mxu1 %v3326_v3 }
  0x4e   :  { %3024 = vmatpush3.bf16.msra.mxu0 %v3023_v35  ;;  %3168 = vmatpush3.bf16.msra.mxu1 %v3023_v35 }
  0x4f   :  { %3025 = vmatprep.subr.bf16.mxu0 %v3326_v3  ;;  %3169 = vmatprep.subr.bf16.mxu1 %v3326_v3 }
  0x52   :  { %3027 = vmatpush3.bf16.msra.mxu0 %v3026_v37  ;;  %3171 = vmatpush3.bf16.msra.mxu1 %v3026_v37 }
  0x53   :  { %3028 = vmatprep.subr.bf16.mxu0 %v3326_v3  ;;  %3172 = vmatprep.subr.bf16.mxu1 %v3326_v3 }
  0x56   :  { %3030 = vmatpush3.bf16.msra.mxu0 %v3029_v38  ;;  %3174 = vmatpush3.bf16.msra.mxu1 %v3029_v38 }
  0x57   :  { %3031 = vmatprep.subr.bf16.mxu0 %v3326_v3  ;;  %3175 = vmatprep.subr.bf16.mxu1 %v3326_v3 }
  0x5a   :  { %3033 = vmatpush3.bf16.msra.mxu0 %v3032_v51  ;;  %3177 = vmatpush3.bf16.msra.mxu1 %v3032_v51 }
  0x5b   :  { %3034 = vmatprep.subr.bf16.mxu0 %v3326_v3  ;;  %3178 = vmatprep.subr.bf16.mxu1 %v3326_v3 }
  0x5e   :  { %3036 = vmatpush3.bf16.msra.mxu0 %v3035_v57  ;;  %3180 = vmatpush3.bf16.msra.mxu1 %v3035_v57 }
  0x5f   :  { %3037 = vmatprep.subr.bf16.mxu0 %v3326_v3  ;;  %3181 = vmatprep.subr.bf16.mxu1 %v3326_v3 }
  0x62   :  { %3039 = vmatpush3.bf16.msra.mxu0 %v3038_v58  ;;  %3183 = vmatpush3.bf16.msra.mxu1 %v3038_v58 }
  0x63   :  { %3040 = vmatprep.subr.bf16.mxu0 %v3326_v3  ;;  %3184 = vmatprep.subr.bf16.mxu1 %v3326_v3 }
  0x65   :  { %2591 = vmatmul.mubr.f32.vlgmr.msra.gmra.mrb[0].mxu0 %v3460_v36  ;;  %2801 = vmatmul.mubr.f32.vlgmr.msra.gmra.mrb[0].mxu1 %v3484_v52 }
  0x66   :  { %3042 = vmatpush3.bf16.msra.mxu0 %v3386_v12  ;;  %3186 = vmatpush3.bf16.msra.mxu1 %v3386_v12 }
  0x67   :  { %3043 = vmatprep.subr.bf16.mxu0 %v3326_v3  ;;  %3187 = vmatprep.subr.bf16.mxu1 %v3326_v3 }
  0x68   :  { %2625 = vmatprep.mubr.msk.f32.mxu0 %vm3327_vm0, %v3328_v11  ;;  %2835 = vmatprep.mubr.msk.f32.mxu1 %vm3327_vm0, %v3328_v11 }
  0x6a   :  { %3045 = vmatpush3.bf16.msra.mxu0 %v3392_v13  ;;  %3189 = vmatpush3.bf16.msra.mxu1 %v3392_v13 }
  0x6b   :  { %3046 = vmatprep.subr.bf16.mxu0 %v3326_v3  ;;  %3190 = vmatprep.subr.bf16.mxu1 %v3326_v3 }
  0x6e   :  { %3048 = vmatpush3.bf16.msra.mxu0 %v3415_v19  ;;  %3192 = vmatpush3.bf16.msra.mxu1 %v3415_v19 }
  0x6f   :  { %3049 = vmatprep.subr.bf16.mxu0 %v3326_v3  ;;  %3193 = vmatprep.subr.bf16.mxu1 %v3326_v3 }
  0x72   :  { %3051 = vmatpush3.bf16.msra.mxu0 %v3443_v29  ;;  %3195 = vmatpush3.bf16.msra.mxu1 %v3443_v29 }
  0x73   :  { %3052 = vmatprep.subr.bf16.mxu0 %v3326_v3  ;;  %3196 = vmatprep.subr.bf16.mxu1 %v3326_v3 }
  0x76   :  { %3054 = vmatpush3.bf16.msra.mxu0 %v3470_v46  ;;  %3198 = vmatpush3.bf16.msra.mxu1 %v3470_v46 }
  0x77   :  { %3055 = vmatprep.subr.bf16.mxu0 %v3326_v3  ;;  %3199 = vmatprep.subr.bf16.mxu1 %v3326_v3 }
  0x7a   :  { %3057 = vmatpush3.bf16.msra.mxu0 %v3486_v53  ;;  %3201 = vmatpush3.bf16.msra.mxu1 %v3486_v53 }
  0x7b   :  { %3058 = vmatprep.subr.bf16.mxu0 %v3326_v3  ;;  %3202 = vmatprep.subr.bf16.mxu1 %v3326_v3 }
  0x7e   :  { %3060 = vmatpush3.bf16.msra.mxu0 %v3488_v54  ;;  %3204 = vmatpush3.bf16.msra.mxu1 %v3488_v54 }
  0x7f   :  { %3061 = vmatprep.subr.bf16.mxu0 %v3326_v3  ;;  %3205 = vmatprep.subr.bf16.mxu1 %v3326_v3 }
  0x82   :  { %3063 = vmatpush3.bf16.msra.mxu0 %v3490_v55  ;;  %3207 = vmatpush3.bf16.msra.mxu1 %v3490_v55 }
  0x83   :  { %3064 = vmatprep.subr.bf16.mxu0 %v3326_v3  ;;  %3208 = vmatprep.subr.bf16.mxu1 %v3326_v3 }
  0x85   :  { %2626 = vmatmul.mubr.f32.vlgmr.msra.gmra.mrb[0].mxu0 %v3849_v0  ;;  %2836 = vmatmul.mubr.f32.vlgmr.msra.gmra.mrb[0].mxu1 %v3850_v1 }
  0x86   :  { %3066 = vmatpush3.bf16.msra.mxu0 %v3556_v34  ;;  %3210 = vmatpush3.bf16.msra.mxu1 %v3556_v34 }
  0x87   :  { %3067 = vmatprep.subr.bf16.mxu0 %v3326_v3  ;;  %3211 = vmatprep.subr.bf16.mxu1 %v3326_v3 }
  0x88   :  { %2660 = vmatprep.mubr.msk.f32.mxu0 %vm3327_vm0, %v3328_v11  ;;  %2870 = vmatprep.mubr.msk.f32.mxu1 %vm3327_vm0, %v3328_v11 }
  0x8a   :  { %3069 = vmatpush3.bf16.msra.mxu0 %v3560_v39  ;;  %3213 = vmatpush3.bf16.msra.mxu1 %v3560_v39 }
  0x8b   :  { %3070 = vmatprep.subr.bf16.mxu0 %v3326_v3  ;;  %3214 = vmatprep.subr.bf16.mxu1 %v3326_v3 }
  0x8e   :  { %3072 = vmatpush3.bf16.msra.mxu0 %v3562_v40  ;;  %3216 = vmatpush3.bf16.msra.mxu1 %v3562_v40 }
  0x8f   :  { %3073 = vmatprep.subr.bf16.mxu0 %v3326_v3  ;;  %3217 = vmatprep.subr.bf16.mxu1 %v3326_v3 }
  0x92   :  { %3075 = vmatpush3.bf16.msra.mxu0 %v3564_v42  ;;  %3219 = vmatpush3.bf16.msra.mxu1 %v3564_v42 }
  0x93   :  { %3076 = vmatprep.subr.bf16.mxu0 %v3326_v3  ;;  %3220 = vmatprep.subr.bf16.mxu1 %v3326_v3 }
  0x96   :  { %3078 = vmatpush3.bf16.msra.mxu0 %v3566_v43  ;;  %3222 = vmatpush3.bf16.msra.mxu1 %v3566_v43 }
  0x97   :  { %3079 = vmatprep.subr.bf16.mxu0 %v3326_v3  ;;  %3223 = vmatprep.subr.bf16.mxu1 %v3326_v3 }
  0x9a   :  { %3081 = vmatpush3.bf16.msra.mxu0 %v3568_v44  ;;  %3225 = vmatpush3.bf16.msra.mxu1 %v3568_v44 }
  0x9b   :  { %3082 = vmatprep.subr.bf16.mxu0 %v3326_v3  ;;  %3226 = vmatprep.subr.bf16.mxu1 %v3326_v3 }
  0x9e   :  { %3084 = vmatpush3.bf16.msra.mxu0 %v3570_v45  ;;  %3228 = vmatpush3.bf16.msra.mxu1 %v3570_v45 }
  0x9f   :  { %3085 = vmatprep.subr.bf16.mxu0 %v3326_v3  ;;  %3229 = vmatprep.subr.bf16.mxu1 %v3326_v3 }
  0xa2   :  { %3087 = vmatpush3.bf16.msra.mxu0 %v3576_v47  ;;  %3231 = vmatpush3.bf16.msra.mxu1 %v3576_v47 }
  0xa3   :  { %3088 = vmatprep.subr.bf16.mxu0 %v3326_v3  ;;  %3232 = vmatprep.subr.bf16.mxu1 %v3326_v3 }
  0xa5   :  { %2661 = vmatmul.mubr.f32.vlgmr.msra.gmra.mrb[0].mxu0 %v3428_v24  ;;  %2871 = vmatmul.mubr.f32.vlgmr.msra.gmra.mrb[0].mxu1 %v3466_v41 }
  0xa6   :  { %3090 = vmatpush3.bf16.msra.mxu0 %v3386_v12  ;;  %3234 = vmatpush3.bf16.msra.mxu1 %v3386_v12 }
  0xa7   :  { %3091 = vmatprep.subr.bf16.mxu0 %v3326_v3  ;;  %3235 = vmatprep.subr.bf16.mxu1 %v3326_v3 }
  0xa8   :  { %2695 = vmatprep.mubr.msk.f32.mxu0 %vm3327_vm0, %v3328_v11  ;;  %2905 = vmatprep.mubr.msk.f32.mxu1 %vm3327_vm0, %v3328_v11 }
  0xaa   :  { %3093 = vmatpush3.bf16.msra.mxu0 %v3392_v13  ;;  %3237 = vmatpush3.bf16.msra.mxu1 %v3392_v13 }
  0xab   :  { %3094 = vmatprep.subr.bf16.mxu0 %v3326_v3  ;;  %3238 = vmatprep.subr.bf16.mxu1 %v3326_v3 }
  0xae   :  { %3096 = vmatpush3.bf16.msra.mxu0 %v3415_v19  ;;  %3240 = vmatpush3.bf16.msra.mxu1 %v3415_v19 }
  0xaf   :  { %3097 = vmatprep.subr.bf16.mxu0 %v3326_v3  ;;  %3241 = vmatprep.subr.bf16.mxu1 %v3326_v3 }
  0xb2   :  { %3099 = vmatpush3.bf16.msra.mxu0 %v3443_v29  ;;  %3243 = vmatpush3.bf16.msra.mxu1 %v3443_v29 }
  0xb3   :  { %3100 = vmatprep.subr.bf16.mxu0 %v3326_v3  ;;  %3244 = vmatprep.subr.bf16.mxu1 %v3326_v3 }
  0xb6   :  { %3102 = vmatpush3.bf16.msra.mxu0 %v3470_v46  ;;  %3246 = vmatpush3.bf16.msra.mxu1 %v3470_v46 }
  0xb7   :  { %3103 = vmatprep.subr.bf16.mxu0 %v3326_v3  ;;  %3247 = vmatprep.subr.bf16.mxu1 %v3326_v3 }
  0xba   :  { %3105 = vmatpush3.bf16.msra.mxu0 %v3486_v53  ;;  %3249 = vmatpush3.bf16.msra.mxu1 %v3486_v53 }
  0xbb   :  { %3106 = vmatprep.subr.bf16.mxu0 %v3326_v3  ;;  %3250 = vmatprep.subr.bf16.mxu1 %v3326_v3 }
  0xbe   :  { %3108 = vmatpush3.bf16.msra.mxu0 %v3488_v54  ;;  %3252 = vmatpush3.bf16.msra.mxu1 %v3488_v54 }
  0xbf   :  { %3109 = vmatprep.subr.bf16.mxu0 %v3326_v3  ;;  %3253 = vmatprep.subr.bf16.mxu1 %v3326_v3  ;;  %v35_v3 = vld [vmem:[%s3843_s3] sm:$0xf] }
  0xc0   :  { %v1331_v12 = vsel %vm1329_vm1, %v35_v3, 0 }
  0xc1   :  { %v3782_v13 = vand.u32 4294901760, %v1331_v12 }
  0xc2   :  { %3111 = vmatpush3.bf16.msra.mxu0 %v3490_v55  ;;  %3255 = vmatpush3.bf16.msra.mxu1 %v3490_v55 }
  0xc3   :  { %2908 = vmatprep.subr.mxu0 %v3328_v11  ;;  %2938 = vmatprep.subr.mxu1 %v3328_v11  ;;  %v1411_v55 = vsub.f32 %v1331_v12, %v3782_v13 }
  0xc5   :  { %2696 = vmatmul.mubr.f32.vlgmr.msra.gmra.mrb[0].mxu0 %v3428_v24  ;;  %2906 = vmatmul.mubr.f32.vlgmr.msra.gmra.mrb[0].mxu1 %v3466_v41  ;;  %v1412_v6 = vand.u32 4294901760, %v1411_v55 }
  0xc6   :  { %2910 = vmatprep.mubr.msk.f32.mxu0 %vm3327_vm0, %v3328_v11  ;;  %2940 = vmatprep.mubr.msk.f32.mxu1 %vm3327_vm0, %v3328_v11 }
  0xc7   :  { %2909 = vmatpush3.msra.mxu0 %v3782_v13  ;;  %2939 = vmatpush3.msra.mxu1 %v3782_v13  ;;  %v1413_v34 = vsub.f32 %v1411_v55, %v1412_v6 }
  0xc8   :  { %2913 = vmatprep.subr.mxu0 %v3328_v11  ;;  %2943 = vmatprep.subr.mxu1 %v3328_v11 }
  0xc9   :  { %v1414_v44 = vand.u32 4294901760, %v1413_v34 }
 0x198   :  { %v673_v19 = vpop.f32.mrb[0].mxu0  ;;  %v1315_v24 = vpop.f32.mrb[0].mxu1 }
 0x199   :  { %v1319_v29 = vmul.f32 0.03125, %v673_v19  ;;  %v2697_v36 = vpop.f32.mrb[1].mxu0  ;;  %v2907_v41 = vpop.f32.mrb[1].mxu1 }
 0x19b   :  { %v1320_v46 = vmul.f32 %v1319_v29, %v673_v19 }
 0x19d   :  { %v1321_v52 = vsub.f32 %v1315_v24, %v1320_v46 }
 0x19f   :  { %v1322_v53 = vmul.f32 0.032258064, %v1321_v52 }
 0x1a1   :  { %v1323_v54 = vadd.f32 1e-05, %v1322_v53 }
 0x1a3   :  { %3300 = vrsqrt.f32 %v1323_v54 }
 0x1ad   :  { %v3301_v2 = vpop.eup %3300 }
 0x1ae   :  { %v1327_v4 = vsel %vm1325_vm2, %v3301_v2, 0  ;;  %v1779_v5 = vmul.f32 %v3301_v2, %v1319_v29 }
 0x1af   :  { %v1399_v7 = vand.u32 4294901760, %v1327_v4 }
 0x1b0   :  { %v1781_v9 = vsel %vm1325_vm2, %v1779_v5, 0 }
 0x1b1   :  { %v1400_v10 = vsub.f32 %v1327_v4, %v1399_v7  ;;  %v1849_v14 = vand.u32 4294901760, %v1781_v9 }
 0x1b3   :  { %v1401_v39 = vand.u32 4294901760, %v1400_v10  ;;  %v1850_v40 = vsub.f32 %v1781_v9, %v1849_v14 }
 0x1b5   :  { %v1402_v42 = vsub.f32 %v1400_v10, %v1401_v39  ;;  %v1851_v43 = vand.u32 4294901760, %v1850_v40 }
 0x1b7   :  { %v1403_v45 = vand.u32 4294901760, %v1402_v42  ;;  %v1852_v47 = vsub.f32 %v1850_v40, %v1851_v43 }
 0x1b9   :  { %2911 = vmatmul.mubr.f32.vlgmr.msra.gmra.mrb[2].mxu0 %v1403_v45  ;;  %v1853_v16 = vand.u32 4294901760, %v1852_v47 }
 0x1ba   :  { %2914 = vmatpush3.msra.mxu0 %v1414_v44  ;;  %2915 = vmatprep.mubr.msk.f32.mxu0 %vm3327_vm0, %v3328_v11 }
 0x1bb   :  { %2941 = vmatmul.mubr.f32.vlgmr.msra.gmra.mrb[2].mxu1 %v1853_v16  ;;  %2918 = vmatprep.subr.mxu0 %v3328_v11 }
 0x1bc   :  { %2944 = vmatpush3.msra.mxu1 %v1414_v44  ;;  %2945 = vmatprep.mubr.msk.f32.mxu1 %vm3327_vm0, %v3328_v11 }
 0x1bd   :  { %2948 = vmatprep.subr.mxu1 %v3328_v11 }
 0x1c1   :  { %2916 = vmatmul.mubr.f32.vlgmr.msra.gmra.mrb[2].mxu0 %v1399_v7 }
 0x1c2   :  { %2919 = vmatpush3.msra.mxu0 %v1411_v55  ;;  %2920 = vmatprep.mubr.msk.f32.mxu0 %vm3327_vm0, %v3328_v11 }
 0x1c3   :  { %2946 = vmatmul.mubr.f32.vlgmr.msra.gmra.mrb[2].mxu1 %v1849_v14  ;;  %2923 = vmatprep.subr.mxu0 %v3328_v11 }
 0x1c4   :  { %2949 = vmatpush3.msra.mxu1 %v1411_v55  ;;  %2950 = vmatprep.mubr.msk.f32.mxu1 %vm3327_vm0, %v3328_v11 }
 0x1c5   :  { %2953 = vmatprep.subr.mxu1 %v3328_v11 }
 0x1c9   :  { %2921 = vmatmul.mubr.f32.vlgmr.msra.gmra.mrb[2].mxu0 %v1400_v10 }
 0x1ca   :  { %2924 = vmatpush3.msra.mxu0 %v3782_v13  ;;  %2925 = vmatprep.mubr.msk.f32.mxu0 %vm3327_vm0, %v3328_v11 }
 0x1cb   :  { %2951 = vmatmul.mubr.f32.vlgmr.msra.gmra.mrb[2].mxu1 %v1850_v40  ;;  %2928 = vmatprep.subr.mxu0 %v3328_v11 }
 0x1cc   :  { %2954 = vmatpush3.msra.mxu1 %v3782_v13  ;;  %2955 = vmatprep.mubr.msk.f32.mxu1 %vm3327_vm0, %v3328_v11 }
 0x1cd   :  { %2958 = vmatprep.subr.mxu1 %v3328_v11 }
 0x1d1   :  { %2926 = vmatmul.mubr.f32.vlgmr.msra.gmra.mrb[2].mxu0 %v1401_v39 }
 0x1d2   :  { %2929 = vmatpush3.msra.mxu0 %v1412_v6  ;;  %2930 = vmatprep.mubr.msk.f32.mxu0 %vm3327_vm0, %v3328_v11 }
 0x1d3   :  { %2956 = vmatmul.mubr.f32.vlgmr.msra.gmra.mrb[2].mxu1 %v1851_v43  ;;  %2933 = vmatprep.subr.mxu0 %v3328_v11 }
 0x1d4   :  { %2959 = vmatpush3.msra.mxu1 %v1412_v6  ;;  %2960 = vmatprep.mubr.msk.f32.mxu1 %vm3327_vm0, %v3328_v11 }
 0x1d5   :  { %2963 = vmatprep.subr.mxu1 %v3328_v11 }
 0x1d9   :  { %2931 = vmatmul.mubr.f32.vlgmr.msra.gmra.mrb[2].mxu0 %v1399_v7 }
 0x1da   :  { %2934 = vmatpush3.msra.mxu0 %v3782_v13  ;;  %2935 = vmatprep.mubr.msk.f32.mxu0 %vm3327_vm0, %v3328_v11 }
 0x1db   :  { %2961 = vmatmul.mubr.f32.vlgmr.msra.gmra.mrb[2].mxu1 %v1849_v14 }
 0x1dc   :  { %2964 = vmatpush3.msra.mxu1 %v3782_v13  ;;  %2965 = vmatprep.mubr.msk.f32.mxu1 %vm3327_vm0, %v3328_v11 }
 0x1e1   :  { %2936 = vmatmul.mubr.f32.vlgmr.msra.gmra.mrb[2].mxu0 %v1399_v7 }
 0x1e3   :  { %2966 = vmatmul.mubr.f32.vlgmr.msra.gmra.mrb[2].mxu1 %v1849_v14 }
 0x2b4   :  { %v1775_v48 = vpop.f32.mrb[2].mxu0 }
 0x2b5   :  { %v2231_v63 = vmul.f32 %v1775_v48, %v3411_v18  ;;  %v2937_v17 = vpop.f32.mrb[3].mxu0 }
 0x2b6   :  { %v2225_v22 = vpop.f32.mrb[2].mxu1 }
 0x2b7   :  { %v2232_v49 = vsub.f32 %v2231_v63, %v2225_v22  ;;  %v2967_v56 = vpop.f32.mrb[3].mxu1 }
 0x2b9   :  { %v2237_v11 = vmul.f32 %v2258_v23, %v2232_v49 }
 0x2bb   :  { %v2242_v26 = vadd.f32 %v2259_v25, %v2237_v11 }
 0x2bd   :  { %2243 = vst [vmem:[#allocation2] sm:$0xf] %v2242_v26 }
 0x2be   :  { %3313 = shalt.err (!%p3310_p4)
}
 0x2bf   :  { %s3314_s5 = scalar_lea.hbm %s3844_s4, 64 }
 0x2c0   :  { %p3315_p5 = scmp.ne.s32.totalorder %s3844_s4, %s3314_s5  ;;  %p3318_p6 = scmp.lt.u32.totalorder %s3314_s5, %s3844_s4 }
 0x2c2   :  { %p3320_p7 = pnand %p3318_p6, %p3315_p5 }
 0x2c4   :  { %3323 = shalt.err (!%p3320_p7)
}
 0x2c5   :  { %2253 = dma.vmem_to_hbm [thread:$0]  %s2251_s27, 64, %s3844_s4, [#allocation3]  }
 0x2c6   :  { %3324 = dma.done.wait [#allocation3], 64  }
 0x2c7   :  { %3325 = vsyncadd [#allocation3], 4294967232 }
 0x2c8   :  { %2257 = vsyncpa [#allocation3], 1 }

</bundles_post_ra>
